<compile_context>
chip_gen: v6e
topology: v6e:2x2x1
jax: 0.10.0
libtpu: 0.0.40
codegen_flags: <defaults>
</compile_context>

<pallas_src>
import math
from functools import partial

import jax
import jax.numpy as jnp
from jax import lax
from jax.experimental import pallas as pl
from jax.experimental.pallas import tpu as pltpu

EPS = 1e-5
_VMEM_LIMIT = 32 * 1024 * 1024          # raise v5e's 16 MiB scoped default
_TARGET_BLOCK_BYTES = 2 * 1024 * 1024   # ~2 MiB f32 blocks (v5e-safe)


def _round_up(a, b):
    return (a + b - 1) // b * b


def _fold_factor(D):
    """F rows folded into the lane axis so L = F*D is a multiple of 128."""
    if D % 128 == 0:
        return 1
    F = math.lcm(D, 128) // D
    return F if F * D <= 1024 else 1


# ---------------------------------------------------------------------------
# Kernel 1: per-tile, per-sublane partial sum / sum-of-squares.
# x block: (tile_r, L); outputs: one (8, L) partial block per grid step.
# Ragged last tile (rows % tile_r != 0) is masked with row-id iota.
# ---------------------------------------------------------------------------
def _stats_kernel(x_ref, sum_ref, sumsq_ref, *, valid_last, ragged):
    tile_r, L = x_ref.shape
    # accumulator chunk height: taller chunk = more independent VALU chains
    ah = 32 if tile_r % 32 == 0 else (16 if tile_r % 16 == 0 else 8)
    n_iter = tile_r // ah
    iota = lax.broadcasted_iota(jnp.int32, (ah, L), 0)

    def run(masked):
        def body(g, carry):
            acc, accsq = carry
            off = pl.multiple_of(g * ah, ah)
            blk = x_ref[pl.ds(off, ah), :].astype(jnp.float32)
            if masked:
                blk = jnp.where(off + iota < valid_last, blk, 0.0)
            return acc + blk, accsq + blk * blk

        init = (jnp.zeros((ah, L), jnp.float32),
                jnp.zeros((ah, L), jnp.float32))
        acc, accsq = lax.fori_loop(0, n_iter, body, init,
                                   unroll=min(n_iter, 4))
        # fold (ah, L) accumulators down to a single (8, L) sublane group
        s = acc[0:8, :]
        q = accsq[0:8, :]
        for k in range(1, ah // 8):
            s = s + acc[k * 8:(k + 1) * 8, :]
            q = q + accsq[k * 8:(k + 1) * 8, :]
        sum_ref[...] = s
        sumsq_ref[...] = q

    if not ragged:
        run(masked=False)
    else:
        last = pl.num_programs(0) - 1

        @pl.when(pl.program_id(0) != last)
        def _():
            run(masked=False)

        @pl.when(pl.program_id(0) == last)
        def _():
            run(masked=True)


# ---------------------------------------------------------------------------
# Kernel 2: fused normalize + affine:  y = x * scale + shift.
# scale/shift packed as a single grid-invariant (2, L) operand.
# ---------------------------------------------------------------------------
def _norm_kernel(x_ref, scale_shift_ref, o_ref):
    x = x_ref[...].astype(jnp.float32)
    y = x * scale_shift_ref[0:1, :] + scale_shift_ref[1:2, :]
    o_ref[...] = y.astype(o_ref.dtype)


@partial(jax.jit, static_argnames=("max_tile_rows",))
def batch_normalization(x, gamma, beta, max_tile_rows=4096):
    """x: (B, N, D); gamma, beta: (D,). Returns (B, N, D) batch-normalized."""
    B, N, D = x.shape
    M = B * N

    F = _fold_factor(D)
    L = F * D

    # Minimal padding: only to make M a multiple of F (needed for the lane
    # fold) and to guarantee >= 8 folded rows.  Zero rows are inert in both
    # the sums and sum-of-squares; their output rows are sliced off at the end.
    M_pad = _round_up(M, F)
    if M_pad < 8 * F:
        M_pad = 8 * F
    x2d = x.reshape(M, D)
    if M_pad != M:
        x2d = jnp.pad(x2d, ((0, M_pad - M), (0, 0)))
    rows = M_pad // F
    xf = x2d.reshape(rows, L)

    # Balanced tiling: ~2 MiB blocks, >= 2 (even) tiles for v7x megacore.
    rows_budget = max(8, (_TARGET_BLOCK_BYTES // (L * 4)) // 8 * 8)
    tile_cap = min(max_tile_rows, rows_budget)
    num_tiles = pl.cdiv(rows, tile_cap)
    if rows >= 16:
        num_tiles = max(num_tiles, 2)
        if num_tiles % 2 == 1:
            num_tiles += 1
    tile_r = _round_up(pl.cdiv(rows, num_tiles), 8)
    ragged = (num_tiles * tile_r) != rows
    valid_last = rows - (num_tiles - 1) * tile_r

    # ---- pass 1: per-tile partial sums (fully parallel grid) ----------------
    stats_fn = partial(_stats_kernel, valid_last=valid_last, ragged=ragged)
    sum_parts, sumsq_parts = pl.pallas_call(
        stats_fn,
        out_shape=(
            jax.ShapeDtypeStruct((num_tiles * 8, L), jnp.float32),
            jax.ShapeDtypeStruct((num_tiles * 8, L), jnp.float32),
        ),
        grid_spec=pltpu.PrefetchScalarGridSpec(
            num_scalar_prefetch=0,
            grid=(num_tiles,),
            in_specs=[pl.BlockSpec((tile_r, L), lambda i: (i, 0))],
            out_specs=(
                pl.BlockSpec((8, L), lambda i: (i, 0)),
                pl.BlockSpec((8, L), lambda i: (i, 0)),
            ),
        ),
        compiler_params=pltpu.CompilerParams(
            dimension_semantics=("parallel",),
            vmem_limit_bytes=_VMEM_LIMIT),
    )(xf)

    # ---- glue: finalize statistics and fold the affine (tiny, jit-fused) ----
    s = sum_parts.reshape(-1, F, D).sum(axis=(0, 1))      # (D,)
    sq = sumsq_parts.reshape(-1, F, D).sum(axis=(0, 1))   # (D,)
    mean = s / M
    var = jnp.maximum(sq / M - mean * mean, 0.0)          # biased variance
    scale = gamma.astype(jnp.float32) / jnp.sqrt(var + EPS)
    shift = beta.astype(jnp.float32) - mean * scale
    scale_shift = jnp.concatenate(
        [jnp.tile(scale, (F,)).reshape(1, L),
         jnp.tile(shift, (F,)).reshape(1, L)], axis=0)    # (2, L)

    # ---- pass 2: y = x * scale + shift (pure streaming) ---------------------
    yf = pl.pallas_call(
        _norm_kernel,
        out_shape=jax.ShapeDtypeStruct((rows, L), x.dtype),
        grid_spec=pltpu.PrefetchScalarGridSpec(
            num_scalar_prefetch=0,
            grid=(num_tiles,),
            in_specs=[
                pl.BlockSpec((tile_r, L), lambda i: (i, 0)),
                pl.BlockSpec((2, L), lambda i: (0, 0)),
            ],
            out_specs=pl.BlockSpec((tile_r, L), lambda i: (i, 0)),
        ),
        compiler_params=pltpu.CompilerParams(
            dimension_semantics=("parallel",),
            vmem_limit_bytes=_VMEM_LIMIT),
    )(xf, scale_shift)

    y2d = yf.reshape(M_pad, D)
    if M_pad != M:
        y2d = y2d[:M]
    return y2d.reshape(B, N, D)


def reference(x, gamma, beta):
    B, N, D = x.shape
    x2d = x.reshape(-1, D).astype(jnp.float32)
    mean = x2d.mean(0, keepdims=True)
    var = x2d.var(0, keepdims=True)           # biased
    y = (x2d - mean) / jnp.sqrt(var + EPS) * gamma.reshape(1, D) + beta.reshape(1, D)
    return y.reshape(B, N, D).astype(x.dtype)


if __name__ == "__main__":
    # Small shapes consistent with the module: (batch=2, seq=8, embed_dim=32)
    B, N, D = 2, 8, 32
    key = jax.random.PRNGKey(0)
    kx, kg, kb = jax.random.split(key, 3)

    x = jax.random.normal(kx, (B, N, D), dtype=jnp.float32)

    # Deterministic parameter init, following init_parameters(): U(-stdv, stdv)
    stdv = 1.0 / math.sqrt(D)
    gamma = jax.random.uniform(kg, (D,), minval=-stdv, maxval=stdv, dtype=jnp.float32)
    beta = jax.random.uniform(kb, (D,), minval=-stdv, maxval=stdv, dtype=jnp.float32)

    y = batch_normalization(x, gamma, beta)
    y = jax.block_until_ready(y)

    y_ref = reference(x, gamma, beta)
    assert jnp.allclose(y, y_ref, atol=1e-5, rtol=1e-5), "mismatch vs reference"

    print("KERNEL_OK")
</pallas_src>

<mosaic_0001>
module attributes {stable_mosaic.version = 11 : i64} {
  func.func @_stats_kernel(%arg0: i32, %arg1: memref<8x128xf32, #tpu.memory_space<vmem>>, %arg2: memref<8x128xf32, #tpu.memory_space<vmem>>, %arg3: memref<8x128xf32, #tpu.memory_space<vmem>>) attributes {dimension_semantics = [#tpu.dimension_semantics<parallel>], iteration_bounds = array<i64: 1>, scalar_prefetch = 0 : i64, scratch_operands = 0 : i64, tpu.core_type = #tpu.core_type<tc>, window_params = [{transform_indices = @transform_0, window_bounds = array<i64: 8, 128>}, {transform_indices = @transform_1, window_bounds = array<i64: 8, 128>}, {transform_indices = @transform_2, window_bounds = array<i64: 8, 128>}]} {
    %cst = arith.constant 0.000000e+00 : f32
    %0 = vector.broadcast %cst : f32 to vector<8x128xf32>
    %cst_0 = arith.constant 0.000000e+00 : f32
    %1 = vector.broadcast %cst_0 : f32 to vector<8x128xf32>
    %c0_i32 = arith.constant 0 : i32
    %c8_i32 = arith.constant 8 : i32
    %2 = arith.muli %c0_i32, %c8_i32 : i32
    %3 = tpu.assume_multiple %2, 8 : i32
    %4 = arith.index_cast %3 : i32 to index
    %c0 = arith.constant 0 : index
    %5 = vector.load %arg1[%4, %c0] : memref<8x128xf32, #tpu.memory_space<vmem>>, vector<8x128xf32>
    %6 = arith.addf %0, %5 : vector<8x128xf32>
    %7 = arith.mulf %5, %5 : vector<8x128xf32>
    %8 = arith.addf %1, %7 : vector<8x128xf32>
    %c1_i32 = arith.constant 1 : i32
    %c0_1 = arith.constant 0 : index
    %c0_2 = arith.constant 0 : index
    %9 = vector.load %arg2[%c0_1, %c0_2] : memref<8x128xf32, #tpu.memory_space<vmem>>, vector<8x128xf32>
    tpu.vector_store %arg2[%c0_1, %c0_2], %6 {strides = array<i32>} : memref<8x128xf32, #tpu.memory_space<vmem>>, vector<8x128xf32>,
    %c0_3 = arith.constant 0 : index
    %c0_4 = arith.constant 0 : index
    %10 = vector.load %arg3[%c0_3, %c0_4] : memref<8x128xf32, #tpu.memory_space<vmem>>, vector<8x128xf32>
    tpu.vector_store %arg3[%c0_3, %c0_4], %8 {strides = array<i32>} : memref<8x128xf32, #tpu.memory_space<vmem>>, vector<8x128xf32>,
    return
  }
  func.func @transform_0(%arg0: i32) -> (i32, i32) {
    %c0_i32 = arith.constant 0 : i32
    %c0_i32_0 = arith.constant 0 : i32
    return %arg0, %c0_i32 : i32, i32
  }
  func.func @transform_1(%arg0: i32) -> (i32, i32) {
    %c0_i32 = arith.constant 0 : i32
    %c0_i32_0 = arith.constant 0 : i32
    return %arg0, %c0_i32 : i32, i32
  }
  func.func @transform_2(%arg0: i32) -> (i32, i32) {
    %c0_i32 = arith.constant 0 : i32
    %c0_i32_0 = arith.constant 0 : i32
    return %arg0, %c0_i32 : i32, i32
  }
}

module attributes {stable_mosaic.version = 11 : i64} {
  func.func @_norm_kernel(%arg0: i32, %arg1: memref<8x128xf32, #tpu.memory_space<vmem>>, %arg2: memref<2x128xf32, #tpu.memory_space<vmem>>, %arg3: memref<8x128xf32, #tpu.memory_space<vmem>>) attributes {dimension_semantics = [#tpu.dimension_semantics<parallel>], iteration_bounds = array<i64: 1>, scalar_prefetch = 0 : i64, scratch_operands = 0 : i64, tpu.core_type = #tpu.core_type<tc>, window_params = [{transform_indices = @transform_0, window_bounds = array<i64: 8, 128>}, {pipeline_mode = #tpu.pipeline_mode<synchronous>, transform_indices = @transform_1, window_bounds = array<i64: 2, 128>}, {transform_indices = @transform_2, window_bounds = array<i64: 8, 128>}]} {
    %c0 = arith.constant 0 : index
    %c0_0 = arith.constant 0 : index
    %0 = vector.load %arg1[%c0, %c0_0] : memref<8x128xf32, #tpu.memory_space<vmem>>, vector<8x128xf32>
    %c0_1 = arith.constant 0 : index
    %c0_2 = arith.constant 0 : index
    %1 = vector.load %arg2[%c0_1, %c0_2] : memref<2x128xf32, #tpu.memory_space<vmem>>, vector<1x128xf32>
    %2 = vector.broadcast %1 : vector<1x128xf32> to vector<8x128xf32>
    %3 = arith.mulf %0, %2 : vector<8x128xf32>
    %c1 = arith.constant 1 : index
    %c0_3 = arith.constant 0 : index
    %4 = vector.load %arg2[%c1, %c0_3] : memref<2x128xf32, #tpu.memory_space<vmem>>, vector<1x128xf32>
    %5 = vector.broadcast %4 : vector<1x128xf32> to vector<8x128xf32>
    %6 = arith.addf %3, %5 : vector<8x128xf32>
    %c0_4 = arith.constant 0 : index
    %c0_5 = arith.constant 0 : index
    %7 = vector.load %arg3[%c0_4, %c0_5] : memref<8x128xf32, #tpu.memory_space<vmem>>, vector<8x128xf32>
    tpu.vector_store %arg3[%c0_4, %c0_5], %6 {strides = array<i32>} : memref<8x128xf32, #tpu.memory_space<vmem>>, vector<8x128xf32>,
    return
  }
  func.func @transform_0(%arg0: i32) -> (i32, i32) {
    %c0_i32 = arith.constant 0 : i32
    %c0_i32_0 = arith.constant 0 : i32
    return %arg0, %c0_i32 : i32, i32
  }
  func.func @transform_1(%arg0: i32) -> (i32, i32) {
    %c0_i32 = arith.constant 0 : i32
    %c0_i32_0 = arith.constant 0 : i32
    %c0_i32_1 = arith.constant 0 : i32
    return %c0_i32, %c0_i32_0 : i32, i32
  }
  func.func @transform_2(%arg0: i32) -> (i32, i32) {
    %c0_i32 = arith.constant 0 : i32
    %c0_i32_0 = arith.constant 0 : i32
    return %arg0, %c0_i32 : i32, i32
  }
}

</mosaic_0001>

<bundles_post_ra>
// kernel: tile.18
= control target key start
LH: loop header
LB: loop body
LE: loop exit
PB: predicated region body
PF: predicated region fallthrough
CT: control target
= control target key end

     0   :  { %s22_s0 = inlined_call_operand.vmem [shape: f32[32], index: 0, kind: input, shape index: {}]   ;;  %s23_s1 = inlined_call_operand.vmem [shape: f32[4,32], index: 1, kind: output, shape index: {}]  }
   0x1   :  { %v4_v0 = vld [vmem:[%s22_s0] ss:$0 sm:$0xff] }
   0x2   :  { %5 = vst [vmem:[%s23_s1] sm:$0xf] %v4_v0 }

// kernel: tile.19
= control target key start
LH: loop header
LB: loop body
LE: loop exit
PB: predicated region body
PF: predicated region fallthrough
CT: control target
= control target key end

     0   :  { %vm8_vm0 = vcmask 261120   ;;  %s40_s8 = smov 32   ;;  %s41_s9 = smov 64   ;;  %vm14_vm1 = vcmask 1048320   ;;  %vm20_vm2 = vcmask 785920   ;;  %vm26_vm3 = vcmask 523520   ;;  %s58_s0 = inlined_call_operand.vmem [shape: f32[4,32], index: 0, kind: input, shape index: {}]   ;;  %s59_s1 = inlined_call_operand.vmem [shape: f32[1,128], index: 1, kind: output, shape index: {}]  }
   0x1   :  { %v5_v0 = vld [vmem:[%s58_s0] sm:$0xf]  ;;  %s39_s0 = smov 96  }
   0x2   :  { %6 = vst [vmem:[#allocation1] sm:$0xf] %v5_v0 }
   0x9   :  { %v11_v1 = vld [vmem:[#allocation1 + $0x3] sm:$0x1]   ;;  %v23_v2 = vld [vmem:[#allocation1 + $0x1] sm:$0x1]   ;;  %v7_v3 = vld [vmem:[#allocation1] sm:$0x1]  }
   0xa   :  { %12 = vrot.lane.b32.xlu0 %v11_v1, %s39_s0  ;;  %24 = vrot.lane.b32.xlu1 %v23_v2, %s40_s8  ;;  %v17_v4 = vld [vmem:[#allocation1 + $0x2] sm:$0x1]   ;;  %9 = vst.msk [vmem:[#allocation0] sm:$0x1] %vm8_vm0, %v7_v3  }
   0xe   :  { %18 = vrot.lane.b32.xlu0 %v17_v4, %s41_s9 }
  0x7c   :  { %v13_v5 = vpop.permute.xlu0 %12   ;;  %v25_v6 = vpop.permute.xlu1 %24  }
  0x7d   :  { %15 = vst.msk [vmem:[#allocation0] sm:$0x1] %vm14_vm1, %v13_v5  }
  0x80   :  { %v19_v7 = vpop.permute.xlu0 %18  }
  0x81   :  { %21 = vst.msk [vmem:[#allocation0] sm:$0x1] %vm20_vm2, %v19_v7  }
  0x82   :  { %27 = vst.msk [vmem:[#allocation0] sm:$0x1] %vm26_vm3, %v25_v6  }
  0x89   :  { %v32_v8 = vld [vmem:[#allocation0] sm:$0x1] }
  0x8a   :  { %35 = vst [vmem:[%s59_s1] sm:$0x1] %v32_v8 }

// kernel: batch_normalization.2
= control target key start
LH: loop header
LB: loop body
LE: loop exit
PB: predicated region body
PF: predicated region fallthrough
CT: control target
= control target key end

     0   :  { %s48_s0 = inlined_call_operand.vmem [shape: f32[8,128], index: 0, kind: input, shape index: {}]   ;;  %s49_s1 = inlined_call_operand.vmem [shape: f32[8,128], index: 1, kind: output, shape index: {0}]   ;;  %s50_s2 = inlined_call_operand.vmem [shape: f32[8,128], index: 2, kind: output, shape index: {1}]  }
   0x1   :  { %v10_v0 = vld [vmem:[%s48_s0] sm:$0xff] }
   0x2   :  { %14 = vst [vmem:[%s49_s1] sm:$0xff] %v10_v0  ;;  %v12_v1 = vmul.f32 %v10_v0, %v10_v0 }
   0x4   :  { %15 = vst [vmem:[%s50_s2] sm:$0xff] %v12_v1 }

// kernel: batch_normalization.3
= control target key start
LH: loop header
LB: loop body
LE: loop exit
PB: predicated region body
PF: predicated region fallthrough
CT: control target
= control target key end

     0   :  { %s58_s0 = inlined_call_operand.vmem [shape: f32[8,128], index: 0, kind: input, shape index: {}]   ;;  %s59_s1 = inlined_call_operand.vmem [shape: f32[2,128], index: 1, kind: input, shape index: {}]   ;;  %s60_s2 = inlined_call_operand.vmem [shape: f32[8,128], index: 2, kind: output, shape index: {}]  }
   0x1   :  { %v11_v0 = vld [vmem:[%s58_s0] sm:$0xff] }
   0x2   :  { %v29_v1 = vld [vmem:[%s59_s1] ss:$0 sm:$0xff]  ;;  %v30_v2 = vld [vmem:[%s59_s1 + $0x1] ss:$0 sm:$0xff] }
   0x3   :  { %v17_v3 = vmul.f32 %v29_v1, %v11_v0 }
   0x5   :  { %v23_v4 = vadd.f32 %v30_v2, %v17_v3 }
   0x7   :  { %24 = vst [vmem:[%s60_s2] sm:$0xff] %v23_v4 }

</bundles_post_ra>
